<compile_context>
chip_gen: v7x
topology: tpu7x:2x2x1
jax: 0.10.0
libtpu: 0.0.40
codegen_flags: <defaults>
</compile_context>

<pallas_src>
import functools

import jax
import jax.numpy as jnp
from jax.experimental import pallas as pl
from jax.experimental.pallas import tpu as pltpu

AUTOENCODING_DIM = 256    # dim_in
WORD_EMBEDDING_DIM = 256  # dim_out


def _round_up(x, m):
    return ((x + m - 1) // m) * m


def _mlp_kernel(x_ref, w1_ref, b1_ref, w2_ref, b2_ref, o_ref):
    # x_ref:  (tm, D_in)      VMEM (compute dtype, e.g. bf16)
    # w1_ref: (D_in, D_out)   VMEM (compute dtype, resident: constant index_map)
    # b1_ref: (1, D_out)      VMEM f32
    # w2_ref: (D_out, D_out)  VMEM (compute dtype, resident)
    # b2_ref: (1, D_out)      VMEM f32
    # o_ref:  (tm, D_out)     VMEM (output dtype)
    x = x_ref[...]
    # First matmul on the MXU with f32 accumulation; bias/ReLU on the VPU.
    h = jnp.dot(x, w1_ref[...], preferred_element_type=jnp.float32)
    h = jnp.maximum(h + b1_ref[...], 0.0)
    # Second matmul: feed the MXU in the weights' dtype, accumulate f32.
    y = jnp.dot(h.astype(w2_ref.dtype), w2_ref[...],
                preferred_element_type=jnp.float32)
    o_ref[...] = (y + b2_ref[...]).astype(o_ref.dtype)


@functools.partial(jax.jit, static_argnames=("tm", "compute_dtype"))
def autoencoding2emb(x, w1, b1, w2, b2, *, tm=512, compute_dtype=jnp.bfloat16):
    """x: [N, D_in] -> [N, D_out].  Weights are [D_in, D_out] / [D_out, D_out].

    tm: max row tile (multiple of 256 recommended; sweep 256/512/1024).
    compute_dtype: MXU input dtype (bf16 default; jnp.float32 for validation).
    """
    n, d_in = x.shape
    d_out = w1.shape[1]
    out_dtype = x.dtype

    # Cast the streamed operand and the weights to the compute dtype;
    # biases stay f32 (added to the f32 accumulator).
    xc = x.astype(compute_dtype)
    w1c = w1.astype(compute_dtype)
    w2c = w2.astype(compute_dtype)
    b1f = b1.astype(jnp.float32)
    b2f = b2.astype(jnp.float32)

    # Effective row tile: adapt down for small batches (sublane-aligned, >= 8)
    # so every grid step sees a full tile -> unmasked stores, full MXU M-axis
    # whenever possible.
    tm_eff = tm if n >= tm else _round_up(n, 8)
    n_pad = _round_up(n, tm_eff)
    if n_pad != n:
        xc = jnp.pad(xc, ((0, n_pad - n), (0, 0)))

    grid = (n_pad // tm_eff,)
    out = pl.pallas_call(
        _mlp_kernel,
        out_shape=jax.ShapeDtypeStruct((n_pad, d_out), out_dtype),
        grid_spec=pltpu.PrefetchScalarGridSpec(
            num_scalar_prefetch=0,
            grid=grid,
            in_specs=[
                pl.BlockSpec((tm_eff, d_in), lambda i: (i, 0)),     # x row-tile
                pl.BlockSpec((d_in, d_out), lambda i: (0, 0)),      # W1 (resident)
                pl.BlockSpec((1, d_out), lambda i: (0, 0)),         # b1
                pl.BlockSpec((d_out, d_out), lambda i: (0, 0)),     # W2 (resident)
                pl.BlockSpec((1, d_out), lambda i: (0, 0)),         # b2
            ],
            out_specs=pl.BlockSpec((tm_eff, d_out), lambda i: (i, 0)),
        ),
        # Row axis is independent -> shard across TensorCores on v7x.
        compiler_params=pltpu.CompilerParams(
            dimension_semantics=("parallel",)),
    )(xc, w1c, b1f, w2c, b2f)

    return out[:n] if n_pad != n else out


def _init_linear(key, fan_in, fan_out, dtype=jnp.float32):
    """PyTorch nn.Linear default init: U(-1/sqrt(fan_in), 1/sqrt(fan_in)).
    Weight returned already transposed to [fan_in, fan_out]."""
    kw, kb = jax.random.split(key)
    bound = 1.0 / jnp.sqrt(jnp.asarray(fan_in, dtype))
    w = jax.random.uniform(kw, (fan_in, fan_out), dtype, -bound, bound)
    b = jax.random.uniform(kb, (1, fan_out), dtype, -bound, bound)
    return w, b


if __name__ == "__main__":
    key = jax.random.PRNGKey(0)
    k_x, k_l1, k_l2 = jax.random.split(key, 3)

    # Small batch of autoencoding vectors; feature dim fixed by the module.
    # N is deliberately NOT a multiple of 8 to exercise the padded tail.
    N = 12
    x = jax.random.normal(k_x, (N, AUTOENCODING_DIM), jnp.float32)

    w1, b1 = _init_linear(k_l1, AUTOENCODING_DIM, WORD_EMBEDDING_DIM)    # Linear1
    w2, b2 = _init_linear(k_l2, WORD_EMBEDDING_DIM, WORD_EMBEDDING_DIM)  # Linear2

    # Pure-JAX references (eval-mode forward).
    ref_f32 = jnp.maximum(x @ w1 + b1, 0.0) @ w2 + b2
    h_bf = jnp.maximum(
        jnp.dot(x.astype(jnp.bfloat16), w1.astype(jnp.bfloat16),
                preferred_element_type=jnp.float32) + b1, 0.0)
    ref_bf16 = jnp.dot(h_bf.astype(jnp.bfloat16), w2.astype(jnp.bfloat16),
                       preferred_element_type=jnp.float32) + b2

    # 1) Validation path: f32 compute dtype, tight tolerance vs f32 reference.
    y32 = autoencoding2emb(x, w1, b1, w2, b2, compute_dtype=jnp.float32)
    jax.block_until_ready(y32)
    assert y32.shape == (N, WORD_EMBEDDING_DIM)
    assert jnp.allclose(y32, ref_f32, atol=1e-4, rtol=1e-4)

    # 2) Performance path: default bf16 inputs / f32 accumulation.
    y = autoencoding2emb(x, w1, b1, w2, b2)
    jax.block_until_ready(y)
    assert y.shape == (N, WORD_EMBEDDING_DIM)
    assert jnp.allclose(y, ref_bf16, atol=2e-3, rtol=2e-3)
    assert jnp.allclose(y, ref_f32, atol=5e-2, rtol=5e-2)

    print("KERNEL_OK")
</pallas_src>

<mosaic_0001>
module attributes {stable_mosaic.version = 11 : i64} {
  func.func @_mlp_kernel(%arg0: i32, %arg1: memref<16x256xf32, #tpu.memory_space<vmem>>, %arg2: memref<256x256xf32, #tpu.memory_space<vmem>>, %arg3: memref<1x256xf32, #tpu.memory_space<vmem>>, %arg4: memref<256x256xf32, #tpu.memory_space<vmem>>, %arg5: memref<1x256xf32, #tpu.memory_space<vmem>>, %arg6: memref<16x256xf32, #tpu.memory_space<vmem>>) attributes {dimension_semantics = [#tpu.dimension_semantics<parallel>], iteration_bounds = array<i64: 1>, scalar_prefetch = 0 : i64, scratch_operands = 0 : i64, tpu.core_type = #tpu.core_type<tc>, window_params = [{transform_indices = @transform_0, window_bounds = array<i64: 16, 256>}, {pipeline_mode = #tpu.pipeline_mode<synchronous>, transform_indices = @transform_1, window_bounds = array<i64: 256, 256>}, {pipeline_mode = #tpu.pipeline_mode<synchronous>, transform_indices = @transform_2, window_bounds = array<i64: 1, 256>}, {pipeline_mode = #tpu.pipeline_mode<synchronous>, transform_indices = @transform_3, window_bounds = array<i64: 256, 256>}, {pipeline_mode = #tpu.pipeline_mode<synchronous>, transform_indices = @transform_4, window_bounds = array<i64: 1, 256>}, {transform_indices = @transform_5, window_bounds = array<i64: 16, 256>}]} {
    %c0 = arith.constant 0 : index
    %c0_0 = arith.constant 0 : index
    %0 = vector.load %arg1[%c0, %c0_0] : memref<16x256xf32, #tpu.memory_space<vmem>>, vector<16x256xf32>
    %c0_1 = arith.constant 0 : index
    %c0_2 = arith.constant 0 : index
    %1 = vector.load %arg2[%c0_1, %c0_2] : memref<256x256xf32, #tpu.memory_space<vmem>>, vector<256x256xf32>
    %cst = arith.constant dense<0.000000e+00> : vector<16x256xf32>
    %2 = tpu.matmul %0, %1, %cst {dimension_numbers = #tpu.dot_dimension_numbers<[1], [0], [0], [1], [0, 0, 1, 1], [], []>} : vector<16x256xf32>, vector<256x256xf32>, vector<16x256xf32> -> vector<16x256xf32>
    %c0_3 = arith.constant 0 : index
    %c0_4 = arith.constant 0 : index
    %3 = vector.load %arg3[%c0_3, %c0_4] : memref<1x256xf32, #tpu.memory_space<vmem>>, vector<1x256xf32>
    %4 = vector.broadcast %3 : vector<1x256xf32> to vector<16x256xf32>
    %5 = arith.addf %2, %4 : vector<16x256xf32>
    %cst_5 = arith.constant 0.000000e+00 : f32
    %6 = vector.broadcast %cst_5 : f32 to vector<16x256xf32>
    %7 = arith.maximumf %5, %6 : vector<16x256xf32>
    %c0_6 = arith.constant 0 : index
    %c0_7 = arith.constant 0 : index
    %8 = vector.load %arg4[%c0_6, %c0_7] : memref<256x256xf32, #tpu.memory_space<vmem>>, vector<256x256xf32>
    %cst_8 = arith.constant dense<0.000000e+00> : vector<16x256xf32>
    %9 = tpu.matmul %7, %8, %cst_8 {dimension_numbers = #tpu.dot_dimension_numbers<[1], [0], [0], [1], [0, 0, 1, 1], [], []>} : vector<16x256xf32>, vector<256x256xf32>, vector<16x256xf32> -> vector<16x256xf32>
    %c0_9 = arith.constant 0 : index
    %c0_10 = arith.constant 0 : index
    %10 = vector.load %arg5[%c0_9, %c0_10] : memref<1x256xf32, #tpu.memory_space<vmem>>, vector<1x256xf32>
    %11 = vector.broadcast %10 : vector<1x256xf32> to vector<16x256xf32>
    %12 = arith.addf %9, %11 : vector<16x256xf32>
    %c0_11 = arith.constant 0 : index
    %c0_12 = arith.constant 0 : index
    %13 = vector.load %arg6[%c0_11, %c0_12] : memref<16x256xf32, #tpu.memory_space<vmem>>, vector<16x256xf32>
    tpu.vector_store %arg6[%c0_11, %c0_12], %12 {strides = array<i32>} : memref<16x256xf32, #tpu.memory_space<vmem>>, vector<16x256xf32>,
    return
  }
  func.func @transform_0(%arg0: i32) -> (i32, i32) {
    %c0_i32 = arith.constant 0 : i32
    %c0_i32_0 = arith.constant 0 : i32
    return %arg0, %c0_i32 : i32, i32
  }
  func.func @transform_1(%arg0: i32) -> (i32, i32) {
    %c0_i32 = arith.constant 0 : i32
    %c0_i32_0 = arith.constant 0 : i32
    %c0_i32_1 = arith.constant 0 : i32
    return %c0_i32, %c0_i32_0 : i32, i32
  }
  func.func @transform_2(%arg0: i32) -> (i32, i32) {
    %c0_i32 = arith.constant 0 : i32
    %c0_i32_0 = arith.constant 0 : i32
    %c0_i32_1 = arith.constant 0 : i32
    return %c0_i32, %c0_i32_0 : i32, i32
  }
  func.func @transform_3(%arg0: i32) -> (i32, i32) {
    %c0_i32 = arith.constant 0 : i32
    %c0_i32_0 = arith.constant 0 : i32
    %c0_i32_1 = arith.constant 0 : i32
    return %c0_i32, %c0_i32_0 : i32, i32
  }
  func.func @transform_4(%arg0: i32) -> (i32, i32) {
    %c0_i32 = arith.constant 0 : i32
    %c0_i32_0 = arith.constant 0 : i32
    %c0_i32_1 = arith.constant 0 : i32
    return %c0_i32, %c0_i32_0 : i32, i32
  }
  func.func @transform_5(%arg0: i32) -> (i32, i32) {
    %c0_i32 = arith.constant 0 : i32
    %c0_i32_0 = arith.constant 0 : i32
    return %arg0, %c0_i32 : i32, i32
  }
}

</mosaic_0001>

<bundles_post_ra>
// kernel: autoencoding2emb.1
= control target key start
LH: loop header
LB: loop body
LE: loop exit
PB: predicated region body
PF: predicated region fallthrough
CT: control target
= control target key end

     0   :  { %10 = vsyncpa [#allocation3], 0  ;;  %s688_s0 = inlined_call_operand.vmem [shape: f32[16,256], index: 0, kind: input, shape index: {}]   ;;  %s689_s1 = inlined_call_operand.hbm [shape: f32[256,256], index: 1, kind: input, shape index: {}]   ;;  %s690_s2 = inlined_call_operand.vmem [shape: f32[1,256], index: 2, kind: input, shape index: {}]   ;;  %s691_s3 = inlined_call_operand.hbm [shape: f32[256,256], index: 3, kind: input, shape index: {}]   ;;  %s692_s4 = inlined_call_operand.vmem [shape: f32[1,256], index: 4, kind: input, shape index: {}]   ;;  %s693_s5 = inlined_call_operand.hbm [shape: f32[16,256], index: 5, kind: output, shape index: {}]  }
   0x1   :  { %11 = vsyncpa [#allocation6], 0 }
   0x2   :  { %12 = vsyncpa [#allocation4], 0  ;;  %s590_s18 = smov [#allocation2]   ;;  %s518_s22 = scalar_lea.hbm %s689_s1, 8192 }
   0x3   :  { %s20_s19 = sshll.u32 %s590_s18, 4  ;;  %p519_p0 = scmp.ne.s32.totalorder %s689_s1, %s518_s22  ;;  %s21_s19 = int_to_ptr.vmem [resolvable:$true] %s20_s19 }
   0x4   :  { %p522_p1 = scmp.lt.u32.totalorder %s518_s22, %s689_s1 }
   0x6   :  { %p524_p2 = pnand %p522_p1, %p519_p0 }
   0x8   :  { %527 = shalt.err (!%p524_p2)
}
   0x9   :  { %s528_s27 = scalar_lea.vmem %s21_s19, 8192  ;;  %p533_p4 = scmp.lt.s32.totalorder %s21_s19, %s21_s19 }
   0xa   :  { %p529_p3 = scmp.ne.s32.totalorder %s21_s19, %s528_s27  ;;  %p534_p5 = scmp.lt.s32.totalorder %s528_s27, %s528_s27 }
   0xc   :  { %p535_p6 = por %p534_p5, %p533_p4 }
   0xe   :  { %p536_p7 = pnand %p535_p6, %p529_p3 }
  0x10   :  { %539 = shalt.err (!%p536_p7)
}
  0x11   :  { %s591_s28 = smov 256   ;;  %s592_s29 = smov 16  }
  0x12   :  { %26 = dma.hbm_to_vmem [thread:$0]  %s689_s1, 8192, %s21_s19, [#allocation3], %s591_s28, %s591_s28, %s592_s29  }
  0x13   :  { %s593_s7 = smov [#allocation5]   ;;  %s540_s11 = scalar_lea.hbm %s691_s3, 8192 }
  0x14   :  { %s34_s8 = sshll.u32 %s593_s7, 4  ;;  %p541_p8 = scmp.ne.s32.totalorder %s691_s3, %s540_s11  ;;  %s35_s8 = int_to_ptr.vmem [resolvable:$true] %s34_s8 }
  0x15   :  { %p544_p9 = scmp.lt.u32.totalorder %s540_s11, %s691_s3 }
  0x17   :  { %p546_p10 = pnand %p544_p9, %p541_p8 }
  0x19   :  { %549 = shalt.err (!%p546_p10)
}
  0x1a   :  { %s550_s16 = scalar_lea.vmem %s35_s8, 8192  ;;  %p555_p12 = scmp.lt.s32.totalorder %s35_s8, %s35_s8 }
  0x1b   :  { %p551_p11 = scmp.ne.s32.totalorder %s35_s8, %s550_s16  ;;  %p556_p13 = scmp.lt.s32.totalorder %s550_s16, %s550_s16 }
  0x1d   :  { %p557_p0 = por %p556_p13, %p555_p12 }
  0x1f   :  { %p558_p1 = pnand %p557_p0, %p551_p11 }
  0x21   :  { %561 = shalt.err (!%p558_p1)
}
  0x22   :  { %40 = dma.hbm_to_vmem [thread:$0]  %s691_s3, 8192, %s35_s8, [#allocation6], %s591_s28, %s591_s28, %s592_s29  }
  0x23   :  { %584 = dma.done.wait [#allocation3], 8192  }
  0x24   :  { %585 = vsyncadd [#allocation3], 4294959104 }
  0x25   :  { %586 = dma.done.wait [#allocation6], 8192  }
  0x26   :  { %587 = vsyncadd [#allocation6], 4294959104  ;;  %v54_v0 = vld [vmem:[#allocation2 + $0x8] sm:$0xff]  ;;  %v56_v1 = vld [vmem:[#allocation2 + $0x18] sm:$0xff]  ;;  %s594_s27 = smov [#allocation7]  }
  0x27   :  { %v53_v2 = vld [vmem:[#allocation2] sm:$0xff]  ;;  %v385_v3 = vpack.c.bf16 %v56_v1, %v54_v0  ;;  %v55_v4 = vld [vmem:[#allocation2 + $0x10] sm:$0xff]  ;;  %v58_v5 = vld [vmem:[#allocation2 + $0x28] sm:$0xff]  ;;  %s372_s30 = sshll.u32 %s594_s27, 4  ;;  %s373_s30 = int_to_ptr.vmem [resolvable:$true] %s372_s30 }
  0x28   :  { %v60_v6 = vld [vmem:[#allocation2 + $0x38] sm:$0xff]  ;;  %v387_v7 = vpack.c.bf16 %v55_v4, %v53_v2  ;;  %v57_v9 = vld [vmem:[#allocation2 + $0x20] sm:$0xff]  ;;  %v59_v10 = vld [vmem:[#allocation2 + $0x30] sm:$0xff]  ;;  %s562_s6 = scalar_lea.vmem %s373_s30, 512  ;;  %p567_p3 = scmp.lt.s32.totalorder %s373_s30, %s373_s30 }
  0x29   :  { %v389_v8 = vpack.c.bf16 %v60_v6, %v58_v5  ;;  %v62_v11 = vld [vmem:[#allocation2 + $0x48] sm:$0xff]  ;;  %386 = vmatprep.subr.bf16.mxu0 %v385_v3  ;;  %v64_v12 = vld [vmem:[#allocation2 + $0x58] sm:$0xff]  ;;  %v391_v13 = vpack.c.bf16 %v59_v10, %v57_v9  ;;  %v61_v15 = vld [vmem:[#allocation2 + $0x40] sm:$0xff]  ;;  %p563_p2 = scmp.ne.s32.totalorder %s373_s30, %s562_s6  ;;  %p568_p4 = scmp.lt.s32.totalorder %s562_s6, %s562_s6 }
  0x2a   :  { %388 = vmatpush1.bf16.msra.mxu0 %v387_v7  ;;  %v393_v14 = vpack.c.bf16 %v64_v12, %v62_v11  ;;  %v63_v16 = vld [vmem:[#allocation2 + $0x50] sm:$0xff]  ;;  %v66_v17 = vld [vmem:[#allocation2 + $0x68] sm:$0xff]  ;;  %v68_v18 = vld [vmem:[#allocation2 + $0x78] sm:$0xff] }
  0x2b   :  { %390 = vmatprep.subr.bf16.mxu0 %v389_v8  ;;  %v395_v19 = vpack.c.bf16 %v63_v16, %v61_v15  ;;  %v397_v20 = vpack.c.bf16 %v68_v18, %v66_v17  ;;  %v65_v21 = vld [vmem:[#allocation2 + $0x60] sm:$0xff]  ;;  %v67_v22 = vld [vmem:[#allocation2 + $0x70] sm:$0xff]  ;;  %v70_v23 = vld [vmem:[#allocation2 + $0x88] sm:$0xff]  ;;  %p569_p5 = por %p568_p4, %p567_p3 }
  0x2c   :  { %v72_v24 = vld [vmem:[#allocation2 + $0x98] sm:$0xff]  ;;  %v399_v25 = vpack.c.bf16 %v67_v22, %v65_v21  ;;  %v69_v27 = vld [vmem:[#allocation2 + $0x80] sm:$0xff]  ;;  %v71_v28 = vld [vmem:[#allocation2 + $0x90] sm:$0xff] }
  0x2d   :  { %v401_v26 = vpack.c.bf16 %v72_v24, %v70_v23  ;;  %v74_v29 = vld [vmem:[#allocation2 + $0xa8] sm:$0xff]  ;;  %v76_v30 = vld [vmem:[#allocation2 + $0xb8] sm:$0xff]  ;;  %v403_v31 = vpack.c.bf16 %v71_v28, %v69_v27  ;;  %v73_v33 = vld [vmem:[#allocation2 + $0xa0] sm:$0xff]  ;;  %p570_p6 = pnand %p569_p5, %p563_p2 }
  0x2e   :  { %392 = vmatpush1.bf16.msra.mxu0 %v391_v13  ;;  %v405_v32 = vpack.c.bf16 %v76_v30, %v74_v29  ;;  %v75_v34 = vld [vmem:[#allocation2 + $0xb0] sm:$0xff]  ;;  %v78_v35 = vld [vmem:[#allocation2 + $0xc8] sm:$0xff]  ;;  %v80_v36 = vld [vmem:[#allocation2 + $0xd8] sm:$0xff] }
  0x2f   :  { %394 = vmatprep.subr.bf16.mxu0 %v393_v14  ;;  %v407_v37 = vpack.c.bf16 %v75_v34, %v73_v33  ;;  %v409_v38 = vpack.c.bf16 %v80_v36, %v78_v35  ;;  %v77_v39 = vld [vmem:[#allocation2 + $0xc0] sm:$0xff]  ;;  %v79_v40 = vld [vmem:[#allocation2 + $0xd0] sm:$0xff]  ;;  %v50_v41 = vld [vmem:[%s688_s0 + $0x8] sm:$0xff] }
  0x30   :  { %v82_v42 = vld [vmem:[#allocation2 + $0xe8] sm:$0xff]  ;;  %v84_v43 = vld [vmem:[#allocation2 + $0xf8] sm:$0xff]  ;;  %193 = vmatprep.mubr.f32.mxu0 %v50_v41  ;;  %v81_v45 = vld [vmem:[#allocation2 + $0xe0] sm:$0xff]  ;;  %v411_v50 = vpack.c.bf16 %v79_v40, %v77_v39 }
  0x31   :  { %v211_v44 = vld [vmem:[#allocation5 + $0x8] sm:$0xff]  ;;  %v83_v46 = vld [vmem:[#allocation2 + $0xf0] sm:$0xff]  ;;  %v213_v47 = vld [vmem:[#allocation5 + $0x18] sm:$0xff]  ;;  %v413_v56 = vpack.c.bf16 %v84_v43, %v82_v42 }
  0x32   :  { %396 = vmatpush1.bf16.msra.mxu0 %v395_v19  ;;  %v210_v48 = vld [vmem:[#allocation5] sm:$0xff]  ;;  %v212_v49 = vld [vmem:[#allocation5 + $0x10] sm:$0xff]  ;;  %v449_v51 = vpack.c.bf16 %v213_v47, %v211_v44  ;;  %v215_v53 = vld [vmem:[#allocation5 + $0x28] sm:$0xff]  ;;  %v415_v0 = vpack.c.bf16 %v83_v46, %v81_v45 }
  0x33   :  { %398 = vmatprep.subr.bf16.mxu0 %v397_v20  ;;  %v451_v52 = vpack.c.bf16 %v212_v49, %v210_v48  ;;  %v217_v54 = vld [vmem:[#allocation5 + $0x38] sm:$0xff]  ;;  %v214_v55 = vld [vmem:[#allocation5 + $0x20] sm:$0xff]  ;;  %v216_v58 = vld [vmem:[#allocation5 + $0x30] sm:$0xff] }
  0x34   :  { %v453_v57 = vpack.c.bf16 %v217_v54, %v215_v53  ;;  %v219_v59 = vld [vmem:[#allocation5 + $0x48] sm:$0xff]  ;;  %v221_v60 = vld [vmem:[#allocation5 + $0x58] sm:$0xff]  ;;  %450 = vmatprep.subr.bf16.mxu1 %v449_v51  ;;  %v455_v63 = vpack.c.bf16 %v216_v58, %v214_v55  ;;  %v85_v1 = vld [vmem:[#allocation2 + $0x100] sm:$0xff] }
  0x35   :  { %v86_v61 = vld [vmem:[#allocation2 + $0x108] sm:$0xff]  ;;  %v88_v62 = vld [vmem:[#allocation2 + $0x118] sm:$0xff]  ;;  %452 = vmatpush1.bf16.msra.mxu1 %v451_v52  ;;  %v457_v2 = vpack.c.bf16 %v221_v60, %v219_v59  ;;  %v218_v3 = vld [vmem:[#allocation5 + $0x40] sm:$0xff] }
  0x36   :  { %400 = vmatpush1.bf16.msra.mxu0 %v399_v25  ;;  %454 = vmatprep.subr.bf16.mxu1 %v453_v57  ;;  %v220_v4 = vld [vmem:[#allocation5 + $0x50] sm:$0xff]  ;;  %v417_v5 = vpack.c.bf16 %v88_v62, %v86_v61  ;;  %v223_v7 = vld [vmem:[#allocation5 + $0x68] sm:$0xff]  ;;  %v225_v8 = vld [vmem:[#allocation5 + $0x78] sm:$0xff] }
  0x37   :  { %402 = vmatprep.subr.bf16.mxu0 %v401_v26  ;;  %v87_v6 = vld [vmem:[#allocation2 + $0x110] sm:$0xff]  ;;  %v90_v9 = vld [vmem:[#allocation2 + $0x128] sm:$0xff]  ;;  %v92_v10 = vld [vmem:[#allocation2 + $0x138] sm:$0xff]  ;;  %v459_v11 = vpack.c.bf16 %v220_v4, %v218_v3  ;;  %v461_v14 = vpack.c.bf16 %v225_v8, %v223_v7 }
  0x38   :  { %v419_v12 = vpack.c.bf16 %v87_v6, %v85_v1  ;;  %v89_v13 = vld [vmem:[#allocation2 + $0x120] sm:$0xff]  ;;  %v224_v16 = vld [vmem:[#allocation5 + $0x70] sm:$0xff]  ;;  %v421_v17 = vpack.c.bf16 %v92_v10, %v90_v9  ;;  %v227_v19 = vld [vmem:[#allocation5 + $0x88] sm:$0xff] }
  0x39   :  { %456 = vmatpush1.bf16.msra.mxu1 %v455_v63  ;;  %v222_v15 = vld [vmem:[#allocation5 + $0x60] sm:$0xff]  ;;  %v91_v18 = vld [vmem:[#allocation2 + $0x130] sm:$0xff]  ;;  %v229_v20 = vld [vmem:[#allocation5 + $0x98] sm:$0xff] }
  0x3a   :  { %404 = vmatpush1.bf16.msra.mxu0 %v403_v31  ;;  %458 = vmatprep.subr.bf16.mxu1 %v457_v2  ;;  %v94_v21 = vld [vmem:[#allocation2 + $0x148] sm:$0xff]  ;;  %v96_v22 = vld [vmem:[#allocation2 + $0x158] sm:$0xff]  ;;  %v463_v23 = vpack.c.bf16 %v224_v16, %v222_v15  ;;  %v423_v24 = vpack.c.bf16 %v91_v18, %v89_v13  ;;  %v93_v25 = vld [vmem:[#allocation2 + $0x140] sm:$0xff]  ;;  %v465_v26 = vpack.c.bf16 %v229_v20, %v227_v19 }
  0x3b   :  { %406 = vmatprep.subr.bf16.mxu0 %v405_v32  ;;  %v226_v27 = vld [vmem:[#allocation5 + $0x80] sm:$0xff]  ;;  %v228_v28 = vld [vmem:[#allocation5 + $0x90] sm:$0xff]  ;;  %v425_v29 = vpack.c.bf16 %v96_v22, %v94_v21  ;;  %v231_v31 = vld [vmem:[#allocation5 + $0xa8] sm:$0xff] }
  0x3c   :  { %v95_v30 = vld [vmem:[#allocation2 + $0x150] sm:$0xff]  ;;  %v233_v32 = vld [vmem:[#allocation5 + $0xb8] sm:$0xff]  ;;  %v98_v33 = vld [vmem:[#allocation2 + $0x168] sm:$0xff]  ;;  %v467_v35 = vpack.c.bf16 %v228_v28, %v226_v27 }
  0x3d   :  { %460 = vmatpush1.bf16.msra.mxu1 %v459_v11  ;;  %v100_v34 = vld [vmem:[#allocation2 + $0x178] sm:$0xff]  ;;  %v427_v36 = vpack.c.bf16 %v95_v30, %v93_v25  ;;  %v230_v39 = vld [vmem:[#allocation5 + $0xa0] sm:$0xff]  ;;  %v232_v40 = vld [vmem:[#allocation5 + $0xb0] sm:$0xff] }
  0x3e   :  { %408 = vmatpush1.bf16.msra.mxu0 %v407_v37  ;;  %462 = vmatprep.subr.bf16.mxu1 %v461_v14  ;;  %v97_v37 = vld [vmem:[#allocation2 + $0x160] sm:$0xff]  ;;  %v429_v41 = vpack.c.bf16 %v100_v34, %v98_v33  ;;  %v99_v42 = vld [vmem:[#allocation2 + $0x170] sm:$0xff]  ;;  %v235_v43 = vld [vmem:[#allocation5 + $0xc8] sm:$0xff]  ;;  %v471_v47 = vpack.c.bf16 %v232_v40, %v230_v39 }
  0x3f   :  { %410 = vmatprep.subr.bf16.mxu0 %v409_v38  ;;  %v469_v38 = vpack.c.bf16 %v233_v32, %v231_v31  ;;  %v237_v44 = vld [vmem:[#allocation5 + $0xd8] sm:$0xff]  ;;  %v102_v45 = vld [vmem:[#allocation2 + $0x188] sm:$0xff]  ;;  %v431_v48 = vpack.c.bf16 %v99_v42, %v97_v37  ;;  %v101_v49 = vld [vmem:[#allocation2 + $0x180] sm:$0xff] }
  0x40   :  { %v104_v46 = vld [vmem:[#allocation2 + $0x198] sm:$0xff]  ;;  %v234_v51 = vld [vmem:[#allocation5 + $0xc0] sm:$0xff]  ;;  %v236_v52 = vld [vmem:[#allocation5 + $0xd0] sm:$0xff] }
  0x41   :  { %464 = vmatpush1.bf16.msra.mxu1 %v463_v23  ;;  %v433_v53 = vpack.c.bf16 %v104_v46, %v102_v45  ;;  %v103_v54 = vld [vmem:[#allocation2 + $0x190] sm:$0xff]  ;;  %v239_v55 = vld [vmem:[#allocation5 + $0xe8] sm:$0xff]  ;;  %v108_v58 = vld [vmem:[#allocation2 + $0x1b8] sm:$0xff]  ;;  %v475_v59 = vpack.c.bf16 %v236_v52, %v234_v51 }
  0x42   :  { %412 = vmatpush1.bf16.msra.mxu0 %v411_v50  ;;  %466 = vmatprep.subr.bf16.mxu1 %v465_v26  ;;  %v473_v50 = vpack.c.bf16 %v237_v44, %v235_v43  ;;  %v106_v57 = vld [vmem:[#allocation2 + $0x1a8] sm:$0xff]  ;;  %v435_v60 = vpack.c.bf16 %v103_v54, %v101_v49  ;;  %v105_v61 = vld [vmem:[#allocation2 + $0x1a0] sm:$0xff]  ;;  %v107_v2 = vld [vmem:[#allocation2 + $0x1b0] sm:$0xff] }
  0x43   :  { %414 = vmatprep.subr.bf16.mxu0 %v413_v56  ;;  %v241_v56 = vld [vmem:[#allocation5 + $0xf8] sm:$0xff]  ;;  %v238_v63 = vld [vmem:[#allocation5 + $0xe0] sm:$0xff]  ;;  %v437_v1 = vpack.c.bf16 %v108_v58, %v106_v57  ;;  %v243_v3 = vld [vmem:[#allocation5 + $0x108] sm:$0xff]  ;;  %v439_v8 = vpack.c.bf16 %v107_v2, %v105_v61 }
  0x44   :  { %v477_v62 = vpack.c.bf16 %v241_v56, %v239_v55  ;;  %v245_v4 = vld [vmem:[#allocation5 + $0x118] sm:$0xff]  ;;  %v109_v9 = vld [vmem:[#allocation2 + $0x1c0] sm:$0xff]  ;;  %v111_v14 = vld [vmem:[#allocation2 + $0x1d0] sm:$0xff] }
  0x45   :  { %468 = vmatpush1.bf16.msra.mxu1 %v467_v35  ;;  %v112_v6 = vld [vmem:[#allocation2 + $0x1d8] sm:$0xff]  ;;  %v481_v10 = vpack.c.bf16 %v245_v4, %v243_v3  ;;  %v242_v11 = vld [vmem:[#allocation5 + $0x100] sm:$0xff]  ;;  %v247_v15 = vld [vmem:[#allocation5 + $0x128] sm:$0xff]  ;;  %v443_v20 = vpack.c.bf16 %v111_v14, %v109_v9  ;;  %v119_v4 = vlaneseq }
  0x46   :  { %416 = vmatpush1.bf16.msra.mxu0 %v415_v0  ;;  %470 = vmatprep.subr.bf16.mxu1 %v469_v38  ;;  %v240_v0 = vld [vmem:[#allocation5 + $0xf0] sm:$0xff]  ;;  %v249_v16 = vld [vmem:[#allocation5 + $0x138] sm:$0xff]  ;;  %v113_v21 = vld [vmem:[#allocation2 + $0x1e0] sm:$0xff] }
  0x47   :  { %418 = vmatprep.subr.bf16.mxu0 %v417_v5  ;;  %v110_v5 = vld [vmem:[#allocation2 + $0x1c8] sm:$0xff]  ;;  %v479_v7 = vpack.c.bf16 %v240_v0, %v238_v63  ;;  %v116_v18 = vld [vmem:[#allocation2 + $0x1f8] sm:$0xff]  ;;  %v485_v22 = vpack.c.bf16 %v249_v16, %v247_v15  ;;  %v246_v23 = vld [vmem:[#allocation5 + $0x120] sm:$0xff] }
  0x48   :  { %v441_v13 = vpack.c.bf16 %v112_v6, %v110_v5  ;;  %v115_v26 = vld [vmem:[#allocation2 + $0x1f0] sm:$0xff]  ;;  %v251_v27 = vld [vmem:[#allocation5 + $0x148] sm:$0xff]  ;;  %v253_v28 = vld [vmem:[#allocation5 + $0x158] sm:$0xff]  ;;  %v120_v5 = vshrl.u32 %v119_v4, 7 }
  0x49   :  { %472 = vmatpush1.bf16.msra.mxu1 %v471_v47  ;;  %v447_v30 = vpack.c.bf16 %v115_v26, %v113_v21  ;;  %v489_v31 = vpack.c.bf16 %v253_v28, %v251_v27  ;;  %v250_v32 = vld [vmem:[#allocation5 + $0x140] sm:$0xff]  ;;  %v252_v33 = vld [vmem:[#allocation5 + $0x150] sm:$0xff]  ;;  %v255_v34 = vld [vmem:[#allocation5 + $0x168] sm:$0xff] }
  0x4a   :  { %420 = vmatpush1.bf16.msra.mxu0 %v419_v12  ;;  %474 = vmatprep.subr.bf16.mxu1 %v473_v50  ;;  %v244_v12 = vld [vmem:[#allocation5 + $0x110] sm:$0xff]  ;;  %v257_v35 = vld [vmem:[#allocation5 + $0x178] sm:$0xff]  ;;  %v49_v37 = vld [vmem:[%s688_s0] sm:$0xff]  ;;  %v121_v6 = vsub.s32 0, %v120_v5 }
  0x4b   :  { %422 = vmatprep.subr.bf16.mxu0 %v421_v17  ;;  %v114_v17 = vld [vmem:[#allocation2 + $0x1e8] sm:$0xff]  ;;  %v483_v19 = vpack.c.bf16 %v244_v12, %v242_v11  ;;  %v493_v38 = vpack.c.bf16 %v257_v35, %v255_v34  ;;  %v254_v39 = vld [vmem:[#allocation5 + $0x160] sm:$0xff]  ;;  %v256_v40 = vld [vmem:[#allocation5 + $0x170] sm:$0xff] }
  0x4c   :  { %v445_v25 = vpack.c.bf16 %v116_v18, %v114_v17  ;;  %v259_v42 = vld [vmem:[#allocation5 + $0x188] sm:$0xff]  ;;  %v261_v43 = vld [vmem:[#allocation5 + $0x198] sm:$0xff]  ;;  %v495_v44 = vpack.c.bf16 %v256_v40, %v254_v39  ;;  %v51_v45 = vld [vmem:[%s688_s0 + $0x10] sm:$0xff] }
  0x4d   :  { %476 = vmatpush1.bf16.msra.mxu1 %v475_v59  ;;  %v497_v46 = vpack.c.bf16 %v261_v43, %v259_v42  ;;  %v258_v47 = vld [vmem:[#allocation5 + $0x180] sm:$0xff]  ;;  %v263_v49 = vld [vmem:[#allocation5 + $0x1a8] sm:$0xff]  ;;  %v265_v50 = vld [vmem:[#allocation5 + $0x1b8] sm:$0xff] }
  0x4e   :  { %424 = vmatpush1.bf16.msra.mxu0 %v423_v24  ;;  %478 = vmatprep.subr.bf16.mxu1 %v477_v62  ;;  %v248_v24 = vld [vmem:[#allocation5 + $0x130] sm:$0xff]  ;;  %v501_v52 = vpack.c.bf16 %v265_v50, %v263_v49  ;;  %v267_v55 = vld [vmem:[#allocation5 + $0x1c8] sm:$0xff]  ;;  %v269_v56 = vld [vmem:[#allocation5 + $0x1d8] sm:$0xff] }
  0x4f   :  { %426 = vmatprep.subr.bf16.mxu0 %v425_v29  ;;  %v487_v29 = vpack.c.bf16 %v248_v24, %v246_v23  ;;  %v264_v54 = vld [vmem:[#allocation5 + $0x1b0] sm:$0xff]  ;;  %v505_v58 = vpack.c.bf16 %v269_v56, %v267_v55  ;;  %v266_v59 = vld [vmem:[#allocation5 + $0x1c0] sm:$0xff]  ;;  %v271_v62 = vld [vmem:[#allocation5 + $0x1e8] sm:$0xff] }
  0x50   :  { %v273_v63 = vld [vmem:[#allocation5 + $0x1f8] sm:$0xff]  ;;  %v272_v2 = vld [vmem:[#allocation5 + $0x1f0] sm:$0xff]  ;;  %v274_v23 = vld [vmem:[%s692_s4] sm:$0x3] }
  0x51   :  { %480 = vmatpush1.bf16.msra.mxu1 %v479_v7  ;;  %v509_v0 = vpack.c.bf16 %v273_v63, %v271_v62  ;;  %v117_v7 = vld [vmem:[%s690_s2] sm:$0x3]  ;;  %v279_v24 = vrot.slane %v274_v23, %v121_v6 }
  0x52   :  { %428 = vmatpush1.bf16.msra.mxu0 %v427_v36  ;;  %482 = vmatprep.subr.bf16.mxu1 %v481_v10  ;;  %v491_v36 = vpack.c.bf16 %v252_v33, %v250_v32  ;;  %v122_v9 = vrot.slane %v117_v7, %v121_v6 }
  0x53   :  { %430 = vmatprep.subr.bf16.mxu0 %v429_v41  ;;  %v52_v41 = vld [vmem:[%s688_s0 + $0x18] sm:$0xff] }
  0x55   :  { %484 = vmatpush1.bf16.msra.mxu1 %v483_v19 }
  0x56   :  { %432 = vmatpush1.bf16.msra.mxu0 %v431_v48  ;;  %486 = vmatprep.subr.bf16.mxu1 %v485_v22  ;;  %v260_v48 = vld [vmem:[#allocation5 + $0x190] sm:$0xff] }
  0x57   :  { %434 = vmatprep.subr.bf16.mxu0 %v433_v53  ;;  %v499_v51 = vpack.c.bf16 %v260_v48, %v258_v47  ;;  %v262_v53 = vld [vmem:[#allocation5 + $0x1a0] sm:$0xff] }
  0x58   :  { %v503_v57 = vpack.c.bf16 %v264_v54, %v262_v53 }
  0x59   :  { %488 = vmatpush1.bf16.msra.mxu1 %v487_v29 }
  0x5a   :  { %436 = vmatpush1.bf16.msra.mxu0 %v435_v60  ;;  %490 = vmatprep.subr.bf16.mxu1 %v489_v31  ;;  %v268_v60 = vld [vmem:[#allocation5 + $0x1d0] sm:$0xff] }
  0x5b   :  { %438 = vmatprep.subr.bf16.mxu0 %v437_v1  ;;  %v507_v61 = vpack.c.bf16 %v268_v60, %v266_v59  ;;  %v270_v1 = vld [vmem:[#allocation5 + $0x1e0] sm:$0xff] }
  0x5c   :  { %v511_v3 = vpack.c.bf16 %v272_v2, %v270_v1 }
  0x5d   :  { %492 = vmatpush1.bf16.msra.mxu1 %v491_v36 }
  0x5e   :  { %440 = vmatpush1.bf16.msra.mxu0 %v439_v8  ;;  %494 = vmatprep.subr.bf16.mxu1 %v493_v38  ;;  %v125_v8 = vsub.s32 1, %v120_v5 }
  0x5f   :  { %442 = vmatprep.subr.bf16.mxu0 %v441_v13 }
  0x60   :  { %v126_v10 = vrot.slane %v117_v7, %v125_v8 }
  0x61   :  { %496 = vmatpush1.bf16.msra.mxu1 %v495_v44 }
  0x62   :  { %444 = vmatpush1.bf16.msra.mxu0 %v443_v20  ;;  %498 = vmatprep.subr.bf16.mxu1 %v497_v46 }
  0x63   :  { %446 = vmatprep.subr.bf16.mxu0 %v445_v25  ;;  %v283_v25 = vrot.slane %v274_v23, %v125_v8 }
  0x65   :  { %500 = vmatpush1.bf16.msra.mxu1 %v499_v51 }
  0x66   :  { %448 = vmatpush1.bf16.msra.mxu0 %v447_v30  ;;  %502 = vmatprep.subr.bf16.mxu1 %v501_v52 }
  0x69   :  { %194 = vmatmul.mubr.f32.vlgmr.msra.gmra.mrb[0].mxu0 %v49_v37  ;;  %504 = vmatpush1.bf16.msra.mxu1 %v503_v57 }
  0x6a   :  { %199 = vmatprep.mubr.f32.mxu0 %v52_v41  ;;  %506 = vmatprep.subr.bf16.mxu1 %v505_v58 }
  0x6d   :  { %200 = vmatmul.mubr.f32.gmra.mrb[2].mxu0 %v51_v45  ;;  %508 = vmatpush1.bf16.msra.mxu1 %v507_v61 }
  0x6e   :  { %510 = vmatprep.subr.bf16.mxu1 %v509_v0 }
  0x71   :  { %512 = vmatpush1.bf16.msra.mxu1 %v511_v3 }
 0x13c   :  { %v195_v11 = vpop.f32.mrb[0].mxu0 }
 0x13d   :  { %v196_v12 = vadd.f32 %v195_v11, %v122_v9  ;;  %v197_v13 = vpop.f32.mrb[1].mxu0 }
 0x13e   :  { %v198_v14 = vadd.f32 %v197_v13, %v126_v10 }
 0x13f   :  { %v206_v17 = vmax.f32 %v196_v12, 0.0 }
 0x140   :  { %v201_v15 = vpop.f32.mrb[2].mxu0  ;;  %v207_v16 = vmax.f32 %v198_v14, 0.0 }
 0x141   :  { %v202_v18 = vadd.f32 %v201_v15, %v122_v9  ;;  %v203_v19 = vpop.f32.mrb[3].mxu0 }
 0x142   :  { %v204_v20 = vadd.f32 %v203_v19, %v126_v10  ;;  %350 = vmatprep.mubr.f32.mxu1 %v207_v16 }
 0x143   :  { %351 = vmatmul.mubr.f32.vlgmr.msra.gmra.mrb[0].mxu1 %v206_v17  ;;  %v208_v22 = vmax.f32 %v202_v18, 0.0 }
 0x144   :  { %v209_v21 = vmax.f32 %v204_v20, 0.0 }
 0x146   :  { %356 = vmatprep.mubr.f32.mxu1 %v209_v21 }
 0x147   :  { %357 = vmatmul.mubr.f32.gmra.mrb[2].mxu1 %v208_v22 }
 0x216   :  { %v352_v26 = vpop.f32.mrb[0].mxu1 }
 0x217   :  { %v353_v27 = vadd.f32 %v352_v26, %v279_v24  ;;  %v354_v28 = vpop.f32.mrb[1].mxu1 }
 0x218   :  { %v355_v29 = vadd.f32 %v354_v28, %v283_v25 }
 0x219   :  { %363 = vst [vmem:[#allocation7] sm:$0xff] %v353_v27 }
 0x21a   :  { %364 = vst [vmem:[#allocation7 + $0x8] sm:$0xff] %v355_v29  ;;  %v358_v30 = vpop.f32.mrb[2].mxu1 }
 0x21b   :  { %v359_v31 = vadd.f32 %v358_v30, %v279_v24  ;;  %v360_v32 = vpop.f32.mrb[3].mxu1 }
 0x21c   :  { %v361_v33 = vadd.f32 %v360_v32, %v283_v25 }
 0x21d   :  { %365 = vst [vmem:[#allocation7 + $0x10] sm:$0xff] %v359_v31 }
 0x21e   :  { %366 = vst [vmem:[#allocation7 + $0x18] sm:$0xff] %v361_v33 }
 0x21f   :  { %573 = shalt.err (!%p570_p6)
}
 0x220   :  { %s574_s8 = scalar_lea.hbm %s693_s5, 512 }
 0x221   :  { %p575_p7 = scmp.ne.s32.totalorder %s693_s5, %s574_s8  ;;  %p578_p8 = scmp.lt.u32.totalorder %s574_s8, %s693_s5 }
 0x223   :  { %p580_p9 = pnand %p578_p8, %p575_p7 }
 0x225   :  { %583 = shalt.err (!%p580_p9)
}
 0x226   :  { %378 = dma.vmem_to_hbm [thread:$0]  %s373_s30, 512, %s693_s5, [#allocation4], %s591_s28, %s591_s28, %s592_s29  }
 0x227   :  { %588 = dma.done.wait [#allocation4], 512  }
 0x228   :  { %589 = vsyncadd [#allocation4], 4294966784 }
 0x229   :  { %382 = vsyncpa [#allocation3], 1 }
 0x22a   :  { %383 = vsyncpa [#allocation6], 1 }
 0x22b   :  { %384 = vsyncpa [#allocation4], 1 }

</bundles_post_ra>
